<compile_context>
chip_gen: v6e
topology: v6e:2x2x1
jax: 0.10.0
libtpu: 0.0.40
codegen_flags: <defaults>
</compile_context>

<pallas_src>
import functools

import numpy as np

import jax
import jax.numpy as jnp
from jax.experimental import pallas as pl
from jax.experimental.pallas import tpu as pltpu

BN_EPS = 1e-5


# ---------------------------------------------------------------------------
# Host-side constant matrices (cached -> built once per geometry, jit-friendly)
# ---------------------------------------------------------------------------
@functools.lru_cache(maxsize=None)
def _adaptive_pool_matrix(out_size: int, in_size: int):
    """(in_size, out_size) matrix M with x @ M == AdaptiveAvgPool1d(out_size)."""
    m = np.zeros((in_size, out_size), dtype=np.float32)
    for i in range(out_size):
        start = (i * in_size) // out_size
        end = -(-((i + 1) * in_size) // out_size)  # ceil
        m[start:end, i] = 1.0 / float(end - start)
    return m


@functools.lru_cache(maxsize=None)
def _bilinear_matrix(out_size: int, in_size: int):
    """(out_size, in_size) bilinear interpolation matrix, align_corners=True."""
    u = np.zeros((out_size, in_size), dtype=np.float32)
    if in_size == 1:
        u[:, 0] = 1.0
        return u
    for o in range(out_size):
        src = o * (in_size - 1) / (out_size - 1) if out_size > 1 else 0.0
        i0 = int(np.floor(src))
        i1 = min(i0 + 1, in_size - 1)
        f = src - i0
        u[o, i0] += 1.0 - f
        u[o, i1] += f
    return u


@functools.lru_cache(maxsize=None)
def _branch_matrices(pool_sizes, h, w, height, width):
    """Column-stacked pooling matrix and row-stacked upsample matrix."""
    mpool = np.concatenate(
        [np.kron(_adaptive_pool_matrix(p, h), _adaptive_pool_matrix(p, w))
         for p in pool_sizes], axis=1)                       # (H*W, sum p^2)
    mup = np.concatenate(
        [np.kron(_bilinear_matrix(height, p), _bilinear_matrix(width, p)).T
         for p in pool_sizes], axis=0)                       # (sum p^2, height*width)
    return mpool, mup


def _vmem_capacity_bytes():
    """Generation-aware VMEM capacity; conservative fallback if query fails."""
    try:
        return int(pltpu.get_tpu_info().vmem_capacity_bytes)
    except Exception:
        return 64 << 20   # v7x per-TensorCore VMEM (smallest of v5e/v6e/v7x)


def _pick_spatial_tile(hw_pad, per_col_bytes, budget_bytes):
    """Largest 128-multiple divisor of hw_pad whose per-step VMEM fits budget.

    Prefers >=2 grid steps per phase so the dominant x stream / output
    writeback are double-buffered.
    """
    assert hw_pad % 128 == 0
    best = 128
    t = 256
    while t <= hw_pad:
        if hw_pad % t == 0 and per_col_bytes * t <= budget_bytes:
            best = t
        t += 128
    if best == hw_pad and hw_pad >= 256 and (hw_pad // 2) % 128 == 0:
        best = hw_pad // 2
    return best


# ---------------------------------------------------------------------------
# Fused Pallas kernel
# ---------------------------------------------------------------------------
def _fused_kernel(x_ref, mpool_ref, w_ref, gb_ref, mup_ref, o_ref,
                  pooled_acc, yrows_acc, *, pool_sizes, k_steps, pool_bf16):
    # x_ref:      (N, Cin, HWt)        current spatial tile of the input
    # mpool_ref:  (HWt, sum p^2)       matching tile of the pooling matrix
    # w_ref:      (B, Cout, Cin)       stacked 1x1 conv weights (bias=False)
    # gb_ref:     (B, Cout, 2)         [:, :, 0]=gamma, [:, :, 1]=beta
    # mup_ref:    (sum p^2, HWt)       HWout tile of the stacked upsample matrix
    # o_ref:      (N, Cin, HWt)        current channel-block x spatial tile of
    #                                  the (N, Cin + B*Cout, HWout) output
    # pooled_acc: (N*Cin, sum p^2)     f32 VMEM accumulator (pooling reduction)
    # yrows_acc:  (N*Cin, sum p^2)     packed conv/BN/ReLU result, zero-padded
    #                                  per branch so phase B is one matmul
    n_batch, c_in, hw_tile = x_ref.shape
    num_b, c_out, _ = w_ref.shape
    p2_tot = mpool_ref.shape[1]

    s = pl.program_id(0)

    @pl.when(s == 0)
    def _():
        pooled_acc[...] = jnp.zeros_like(pooled_acc)

    # -------- Phase A: pooling reduction + passthrough streaming (torch.cat).
    @pl.when(s < k_steps)
    def _():
        x_tile = x_ref[...]                                    # (N, Cin, HWt)
        # Stream the ORIGINAL x values into the passthrough channel-block; this
        # block is written back to HBM per spatial tile (pipelined).
        o_ref[...] = x_tile.astype(o_ref.dtype)
        x2d = x_tile.reshape(n_batch * c_in, hw_tile)          # Cin % 8 == 0 -> free
        mp = mpool_ref[...]
        if pool_bf16:
            # In-kernel cast only for the matmul operands (f32 accumulation);
            # the passthrough above keeps full precision, no host-side astype.
            x2d = x2d.astype(jnp.bfloat16)
            mp = mp.astype(jnp.bfloat16)
        pooled_acc[...] += jnp.dot(x2d, mp, preferred_element_type=jnp.float32)

    # -------- Transition (last reduction step): 1x1 conv + BN + ReLU per
    # branch, packed into one zero-padded (N*Cin, sum p^2) matrix so phase B
    # needs a single matmul per spatial tile (K = sum p^2 instead of 4 tiny K).
    @pl.when(s == k_steps - 1)
    def _():
        pooled = pooled_acc[...]                               # (N*Cin, sum p^2)
        row_blocks = [[None] * num_b for _ in range(n_batch)]
        off = 0
        for b, p in enumerate(pool_sizes):
            p2 = p * p
            # Lane-stack the N batch elements: (Cin, N*p^2). Happens ONCE per
            # kernel (off the per-tile path), so the unaligned lane slices are
            # a bounded one-time cost.
            pooled_b = jnp.concatenate(
                [pooled[nn * c_in:(nn + 1) * c_in, off:off + p2]
                 for nn in range(n_batch)], axis=1)
            # 1x1 conv == channel-mixing matmul over the whole batch at once.
            y = jnp.dot(w_ref[b], pooled_b.astype(w_ref.dtype),
                        preferred_element_type=jnp.float32)    # (Cout, N*p^2)
            # BatchNorm2d, training-mode batch statistics (biased variance).
            cnt = float(n_batch * p2)
            mean = jnp.sum(y, axis=1, keepdims=True) / cnt
            cent = y - mean
            var = jnp.sum(cent * cent, axis=1, keepdims=True) / cnt
            scale = gb_ref[b][:, 0:1] * jax.lax.rsqrt(var + BN_EPS)
            beta = gb_ref[b][:, 1:2]
            yr = jnp.maximum(cent * scale + beta, 0.0)         # (Cout, N*p^2)
            # Zero-pad branch b's columns into the full (sum p^2) width so one
            # fused matmul against the row-stacked Mup does every branch.
            rem = p2_tot - off - p2
            for nn in range(n_batch):
                blk = yr[:, nn * p2:(nn + 1) * p2]
                parts = (([jnp.zeros((c_out, off), jnp.float32)] if off else [])
                         + [blk]
                         + ([jnp.zeros((c_out, rem), jnp.float32)] if rem else []))
                row_blocks[nn][b] = (parts[0] if len(parts) == 1
                                     else jnp.concatenate(parts, axis=1))
            off += p2
        # Row order [n][b][cout] so phase B stores are a single full-block
        # reshape (no per-(b,n) sublane-sliced stores on the hot path).
        yrows_acc[...] = jnp.concatenate(
            [row_blocks[nn][b] for nn in range(n_batch) for b in range(num_b)],
            axis=0)                                            # (N*Cin, sum p^2)

    # -------- Phase B: fused bilinear upsample of ALL branches for ONE HWout
    # tile, stored into the branch channel-block of the output (pipelined).
    @pl.when(s >= k_steps)
    def _():
        up = jnp.dot(yrows_acc[...].astype(mup_ref.dtype), mup_ref[...],
                     preferred_element_type=jnp.float32)       # (N*Cin, HWt)
        o_ref[...] = up.reshape(n_batch, c_in, hw_tile).astype(o_ref.dtype)


# ---------------------------------------------------------------------------
# Wrapper
# ---------------------------------------------------------------------------
def pyramid_pooling(x, conv_ws, gammas, betas, pool_sizes, height, width,
                    *, pool_matmul_bf16=False):
    """Forward pass of PyramidPooling (training-mode BatchNorm, bias-free 1x1 conv).

    pool_matmul_bf16: cast the pooling-matmul operands to bf16 *inside the
    kernel* (f32 accumulation).  Recommended on v5e (bf16-native MXU); default
    off so the f32 reference numerics match exactly.  The passthrough concat
    channels always carry the original x values.
    """
    n, c_in, h, w = x.shape
    assert (h, w) == (height, width), (
        "torch.cat in the reference requires input spatial size == upsample target")
    num_b = len(pool_sizes)
    c_out = conv_ws[0].shape[0]
    # Standard PSPNet: out_channels = in_channels / len(pool_sizes).
    assert num_b * c_out == c_in, "channel-blocked output requires B*Cout == Cin"
    assert c_in % 8 == 0, "Cin must be sublane (8) aligned for the output BlockSpec"
    c_tot = c_in + num_b * c_out
    hw = h * w
    p2_tot = sum(p * p for p in pool_sizes)

    # ---- pad the flattened spatial axis to a multiple of 128 (lane-aligned
    # tiles even for non-128-divisible H*W; zero rows/cols keep the math exact).
    hw_pad = ((hw + 127) // 128) * 128

    mpool_np, mup_np = _branch_matrices(tuple(pool_sizes), h, w, height, width)
    if hw_pad != hw:
        mpool_np = np.pad(mpool_np, ((0, hw_pad - hw), (0, 0)))
        mup_np = np.pad(mup_np, ((0, 0), (0, hw_pad - hw)))
    mpool = jnp.asarray(mpool_np, jnp.float32)                 # (HWpad, sum p^2)
    mup = jnp.asarray(mup_np, jnp.float32)                     # (sum p^2, HWpad)

    # x stays in its producer dtype; no host-side astype (would add an HBM pass).
    x_flat = x.reshape(n, c_in, hw)
    if hw_pad != hw:
        x_flat = jnp.pad(x_flat, ((0, 0), (0, 0), (0, hw_pad - hw)))

    w_stack = jnp.stack([jnp.asarray(cw, jnp.float32).reshape(c_out, c_in)
                         for cw in conv_ws])                                 # (B, Cout, Cin)
    gb = jnp.stack([jnp.concatenate(
        [jnp.asarray(g, jnp.float32).reshape(c_out, 1),
         jnp.asarray(bt, jnp.float32).reshape(c_out, 1)], axis=1)
        for g, bt in zip(gammas, betas)])                                    # (B, Cout, 2)

    # ---- generation-aware VMEM budget and spatial tile ------------------------
    cap = _vmem_capacity_bytes()
    x_bpe = x_flat.dtype.itemsize
    fixed = (num_b * c_out * c_in * 4                 # conv weights (resident)
             + num_b * max(c_out, 8) * 128 * 4        # gamma/beta (lane-padded)
             + n * c_in * p2_tot * 4                  # pooled accumulator
             + n * c_in * p2_tot * 4)                 # packed conv/BN/ReLU result
    per_col = (2 * n * c_in * x_bpe                   # x tile (double-buffered)
               + 2 * p2_tot * 4                       # Mpool tile
               + 2 * p2_tot * 4                       # Mup tile
               + 2 * n * c_in * 4                     # output tile
               + n * c_in * 4)                        # 'up' temporary in phase B
    budget = max(int(0.70 * cap) - fixed, per_col * 128)
    hw_tile = _pick_spatial_tile(hw_pad, per_col, budget)
    k_steps = hw_pad // hw_tile
    grid = (2 * k_steps,)                             # phase A (K) + phase B (K)

    est = fixed + per_col * hw_tile
    vmem_limit = int(min(int(0.92 * cap), max(2 * est, 32 << 20)))

    cost = pl.CostEstimate(
        flops=(2 * n * c_in * hw_pad * p2_tot                 # pooling stream
               + 2 * n * c_out * c_in * p2_tot                # 1x1 convs
               + 2 * n * c_in * p2_tot * hw_pad),             # fused upsample
        transcendentals=num_b * c_out,
        bytes_accessed=(x_flat.size * x_bpe + mpool.size * 4 + mup.size * 4
                        + w_stack.size * 4 + n * c_tot * hw_pad * 4))

    kernel = functools.partial(_fused_kernel, pool_sizes=tuple(pool_sizes),
                               k_steps=k_steps, pool_bf16=pool_matmul_bf16)

    # Index maps: clamp the phase-A inputs during phase B (no re-fetch of x),
    # and switch the output to the branch channel-block during phase B.
    def x_map(s):
        return (0, 0, jnp.minimum(s, k_steps - 1))

    def mpool_map(s):
        return (jnp.minimum(s, k_steps - 1), 0)

    def const_map(s):
        return (0, 0, 0)

    def mup_map(s):
        return (0, jnp.maximum(s - k_steps, 0))

    def out_map(s):
        is_epi = jnp.where(s < k_steps, 0, 1)
        return (0, is_epi, s - is_epi * k_steps)

    out_flat = pl.pallas_call(
        kernel,
        out_shape=jax.ShapeDtypeStruct((n, c_tot, hw_pad), jnp.float32),
        grid=grid,
        in_specs=[
            pl.BlockSpec((n, c_in, hw_tile), x_map),
            pl.BlockSpec((hw_tile, p2_tot), mpool_map),
            pl.BlockSpec((num_b, c_out, c_in), const_map),
            pl.BlockSpec((num_b, c_out, 2), const_map),
            pl.BlockSpec((p2_tot, hw_tile), mup_map),
        ],
        out_specs=pl.BlockSpec((n, c_in, hw_tile), out_map),
        scratch_shapes=[pltpu.VMEM((n * c_in, p2_tot), jnp.float32),
                        pltpu.VMEM((n * c_in, p2_tot), jnp.float32)],
        compiler_params=pltpu.CompilerParams(
            dimension_semantics=("arbitrary",),
            vmem_limit_bytes=vmem_limit),
        cost_estimate=cost,
    )(x_flat, mpool, w_stack, gb, mup)

    if hw_pad != hw:
        out_flat = out_flat[:, :, :hw]
    return out_flat.reshape(n, c_tot, height, width)


# ---------------------------------------------------------------------------
# Pure-JAX reference (same math, high-precision einsums) for validation
# ---------------------------------------------------------------------------
def _reference(x, conv_ws, gammas, betas, pool_sizes, height, width):
    n, c_in, h, w = x.shape
    xf = x.reshape(n, c_in, h * w)
    hp = jax.lax.Precision.HIGHEST
    outs = [x]
    for p, cw, g, bt in zip(pool_sizes, conv_ws, gammas, betas):
        mpool = jnp.asarray(np.kron(_adaptive_pool_matrix(p, h),
                                    _adaptive_pool_matrix(p, w)))
        mup = jnp.asarray(np.kron(_bilinear_matrix(height, p),
                                  _bilinear_matrix(width, p)).T)
        pooled = jnp.einsum("nch,hq->ncq", xf, mpool, precision=hp)
        y = jnp.einsum("oc,ncq->noq", cw, pooled, precision=hp)
        mean = jnp.mean(y, axis=(0, 2), keepdims=True)
        var = jnp.mean((y - mean) ** 2, axis=(0, 2), keepdims=True)
        yn = (y - mean) * jax.lax.rsqrt(var + BN_EPS) * g.reshape(1, -1, 1) \
            + bt.reshape(1, -1, 1)
        yr = jnp.maximum(yn, 0.0)
        up = jnp.einsum("noq,qr->nor", yr, mup, precision=hp)
        outs.append(up.reshape(n, -1, height, width))
    return jnp.concatenate(outs, axis=1)


if __name__ == "__main__":
    key = jax.random.PRNGKey(0)
    N, Cin, H, W = 2, 8, 16, 16
    pool_sizes = (6, 3, 2, 1)
    Cout = Cin // len(pool_sizes)

    keys = jax.random.split(key, 1 + 3 * len(pool_sizes))
    kx = keys[0]
    x = jax.random.normal(kx, (N, Cin, H, W), dtype=jnp.float32)

    # 1x1 conv weights (bias=False); BatchNorm affine params (non-trivial to
    # exercise gamma/beta).
    conv_ws, gammas, betas = [], [], []
    for i in range(len(pool_sizes)):
        kw, kg, kb = keys[1 + 3 * i:4 + 3 * i]
        conv_ws.append(jax.random.normal(kw, (Cout, Cin), jnp.float32)
                       / np.sqrt(Cin))
        gammas.append(1.0 + 0.1 * jax.random.normal(kg, (Cout, 1), jnp.float32))
        betas.append(0.1 * jax.random.normal(kb, (Cout, 1), jnp.float32))

    out = pyramid_pooling(x, conv_ws, gammas, betas, pool_sizes, H, W)
    out = jax.block_until_ready(out)

    expected_shape = (N, Cin + Cout * len(pool_sizes), H, W)
    assert out.shape == expected_shape, (out.shape, expected_shape)
    assert bool(jnp.all(jnp.isfinite(out)))

    ref = jax.block_until_ready(
        _reference(x, conv_ws, gammas, betas, pool_sizes, H, W))
    np.testing.assert_allclose(np.asarray(out), np.asarray(ref),
                               rtol=2e-3, atol=2e-3)
    print("KERNEL_OK")
</pallas_src>

<mosaic_0001>
module attributes {stable_mosaic.version = 11 : i64} {
  func.func @_fused_kernel(%arg0: i32, %arg1: memref<2x8x128xf32, #tpu.memory_space<vmem>>, %arg2: memref<128x50xf32, #tpu.memory_space<vmem>>, %arg3: memref<4x2x8xf32, #tpu.memory_space<vmem>>, %arg4: memref<4x2x2xf32, #tpu.memory_space<vmem>>, %arg5: memref<50x128xf32, #tpu.memory_space<vmem>>, %arg6: memref<2x8x128xf32, #tpu.memory_space<vmem>>, %arg7: memref<16x50xf32, #tpu.memory_space<vmem>>, %arg8: memref<16x50xf32, #tpu.memory_space<vmem>>) attributes {dimension_semantics = [#tpu.dimension_semantics<arbitrary>], iteration_bounds = array<i64: 4>, scalar_prefetch = 0 : i64, scratch_operands = 2 : i64, tpu.core_type = #tpu.core_type<tc>, window_params = [{transform_indices = @transform_0, window_bounds = array<i64: 2, 8, 128>}, {transform_indices = @transform_1, window_bounds = array<i64: 128, 50>}, {pipeline_mode = #tpu.pipeline_mode<synchronous>, transform_indices = @transform_2, window_bounds = array<i64: 4, 2, 8>}, {pipeline_mode = #tpu.pipeline_mode<synchronous>, transform_indices = @transform_3, window_bounds = array<i64: 4, 2, 2>}, {transform_indices = @transform_4, window_bounds = array<i64: 50, 128>}, {transform_indices = @transform_5, window_bounds = array<i64: 2, 8, 128>}]} {
    %c0_i32 = arith.constant 0 : i32
    %0 = arith.cmpi eq, %arg0, %c0_i32 : i32
    %1 = arith.extui %0 : i1 to i32
    %c0_i32_0 = arith.constant 0 : i32
    %2 = arith.cmpi ne, %1, %c0_i32_0 : i32
    scf.if %2 {
      %cst = arith.constant 0.000000e+00 : f32
      %12 = vector.broadcast %cst : f32 to vector<16x50xf32>
      %c0 = arith.constant 0 : index
      %c0_5 = arith.constant 0 : index
      %13 = vector.load %arg7[%c0, %c0_5] : memref<16x50xf32, #tpu.memory_space<vmem>>, vector<16x50xf32>
      tpu.vector_store %arg7[%c0, %c0_5], %12 {strides = array<i32>} : memref<16x50xf32, #tpu.memory_space<vmem>>, vector<16x50xf32>,
    } else {
    }
    %c2_i32 = arith.constant 2 : i32
    %3 = arith.cmpi slt, %arg0, %c2_i32 : i32
    %4 = arith.extui %3 : i1 to i32
    %c0_i32_1 = arith.constant 0 : i32
    %5 = arith.cmpi ne, %4, %c0_i32_1 : i32
    scf.if %5 {
      %c0 = arith.constant 0 : index
      %c0_5 = arith.constant 0 : index
      %c0_6 = arith.constant 0 : index
      %12 = vector.load %arg1[%c0, %c0_5, %c0_6] : memref<2x8x128xf32, #tpu.memory_space<vmem>>, vector<2x8x128xf32>
      %c0_7 = arith.constant 0 : index
      %c0_8 = arith.constant 0 : index
      %c0_9 = arith.constant 0 : index
      %13 = vector.load %arg6[%c0_7, %c0_8, %c0_9] : memref<2x8x128xf32, #tpu.memory_space<vmem>>, vector<2x8x128xf32>
      tpu.vector_store %arg6[%c0_7, %c0_8, %c0_9], %12 {strides = array<i32>} : memref<2x8x128xf32, #tpu.memory_space<vmem>>, vector<2x8x128xf32>,
      %14 = vector.shape_cast %12 : vector<2x8x128xf32> to vector<16x128xf32>
      %c0_10 = arith.constant 0 : index
      %c0_11 = arith.constant 0 : index
      %15 = vector.load %arg2[%c0_10, %c0_11] : memref<128x50xf32, #tpu.memory_space<vmem>>, vector<128x50xf32>
      %c0_12 = arith.constant 0 : index
      %c0_13 = arith.constant 0 : index
      %16 = vector.load %arg7[%c0_12, %c0_13] : memref<16x50xf32, #tpu.memory_space<vmem>>, vector<16x50xf32>
      %cst = arith.constant dense<0.000000e+00> : vector<16x50xf32>
      %17 = tpu.matmul %14, %15, %cst {dimension_numbers = #tpu.dot_dimension_numbers<[1], [0], [0], [1], [0, 0, 1, 1], [], []>} : vector<16x128xf32>, vector<128x50xf32>, vector<16x50xf32> -> vector<16x50xf32>
      %18 = arith.addf %16, %17 : vector<16x50xf32>
      %c0_14 = arith.constant 0 : index
      %c0_15 = arith.constant 0 : index
      %19 = vector.load %arg7[%c0_14, %c0_15] : memref<16x50xf32, #tpu.memory_space<vmem>>, vector<16x50xf32>
      tpu.vector_store %arg7[%c0_14, %c0_15], %18 {strides = array<i32>} : memref<16x50xf32, #tpu.memory_space<vmem>>, vector<16x50xf32>,
    } else {
    }
    %c1_i32 = arith.constant 1 : i32
    %6 = arith.cmpi eq, %arg0, %c1_i32 : i32
    %7 = arith.extui %6 : i1 to i32
    %c0_i32_2 = arith.constant 0 : i32
    %8 = arith.cmpi ne, %7, %c0_i32_2 : i32
    scf.if %8 {
      %c0 = arith.constant 0 : index
      %c0_5 = arith.constant 0 : index
      %12 = vector.load %arg7[%c0, %c0_5] : memref<16x50xf32, #tpu.memory_space<vmem>>, vector<16x50xf32>
      %13 = vector.extract_strided_slice %12 {offsets = [0, 0], sizes = [8, 36], strides = [1, 1]} : vector<16x50xf32> to vector<8x36xf32>
      %14 = vector.extract_strided_slice %12 {offsets = [8, 0], sizes = [8, 36], strides = [1, 1]} : vector<16x50xf32> to vector<8x36xf32>
      %15 = tpu.concatenate %13, %14 in 1 : vector<8x36xf32>, vector<8x36xf32> -> vector<8x72xf32>
      %c0_6 = arith.constant 0 : index
      %c0_7 = arith.constant 0 : index
      %c0_8 = arith.constant 0 : index
      %16 = vector.load %arg3[%c0_6, %c0_7, %c0_8] : memref<4x2x8xf32, #tpu.memory_space<vmem>>, vector<1x2x8xf32>
      %17 = vector.shape_cast %16 : vector<1x2x8xf32> to vector<2x8xf32>
      %cst = arith.constant dense<0.000000e+00> : vector<2x72xf32>
      %18 = tpu.matmul %17, %15, %cst {dimension_numbers = #tpu.dot_dimension_numbers<[1], [0], [0], [1], [0, 0, 1, 1], [], []>} : vector<2x8xf32>, vector<8x72xf32>, vector<2x72xf32> -> vector<2x72xf32>
      %cst_9 = arith.constant dense<0.000000e+00> : vector<2xf32>
      %19 = vector.multi_reduction <add>, %18, %cst_9 [1] : vector<2x72xf32> to vector<2xf32>
      %20 = vector.shape_cast %19 : vector<2xf32> to vector<2x1xf32>
      %cst_10 = arith.constant 7.200000e+01 : f32
      %21 = vector.broadcast %cst_10 : f32 to vector<2x1xf32>
      %22 = arith.divf %20, %21 : vector<2x1xf32>
      %23 = vector.broadcast %22 : vector<2x1xf32> to vector<2x72xf32>
      %24 = arith.subf %18, %23 : vector<2x72xf32>
      %25 = arith.mulf %24, %24 : vector<2x72xf32>
      %cst_11 = arith.constant dense<0.000000e+00> : vector<2xf32>
      %26 = vector.multi_reduction <add>, %25, %cst_11 [1] : vector<2x72xf32> to vector<2xf32>
      %27 = vector.shape_cast %26 : vector<2xf32> to vector<2x1xf32>
      %cst_12 = arith.constant 7.200000e+01 : f32
      %28 = vector.broadcast %cst_12 : f32 to vector<2x1xf32>
      %29 = arith.divf %27, %28 : vector<2x1xf32>
      %c0_13 = arith.constant 0 : index
      %c0_14 = arith.constant 0 : index
      %c0_15 = arith.constant 0 : index
      %30 = vector.load %arg4[%c0_13, %c0_14, %c0_15] : memref<4x2x2xf32, #tpu.memory_space<vmem>>, vector<1x2x2xf32>
      %31 = vector.shape_cast %30 : vector<1x2x2xf32> to vector<2x2xf32>
      %32 = vector.extract_strided_slice %31 {offsets = [0, 0], sizes = [2, 1], strides = [1, 1]} : vector<2x2xf32> to vector<2x1xf32>
      %cst_16 = arith.constant 9.99999974E-6 : f32
      %33 = vector.broadcast %cst_16 : f32 to vector<2x1xf32>
      %34 = arith.addf %29, %33 : vector<2x1xf32>
      %35 = math.rsqrt %34 : vector<2x1xf32>
      %36 = arith.mulf %32, %35 : vector<2x1xf32>
      %c0_17 = arith.constant 0 : index
      %c0_18 = arith.constant 0 : index
      %c0_19 = arith.constant 0 : index
      %37 = vector.load %arg4[%c0_17, %c0_18, %c0_19] : memref<4x2x2xf32, #tpu.memory_space<vmem>>, vector<1x2x2xf32>
      %38 = vector.shape_cast %37 : vector<1x2x2xf32> to vector<2x2xf32>
      %39 = vector.extract_strided_slice %38 {offsets = [0, 1], sizes = [2, 1], strides = [1, 1]} : vector<2x2xf32> to vector<2x1xf32>
      %40 = vector.broadcast %36 : vector<2x1xf32> to vector<2x72xf32>
      %41 = arith.mulf %24, %40 : vector<2x72xf32>
      %42 = vector.broadcast %39 : vector<2x1xf32> to vector<2x72xf32>
      %43 = arith.addf %41, %42 : vector<2x72xf32>
      %cst_20 = arith.constant 0.000000e+00 : f32
      %44 = vector.broadcast %cst_20 : f32 to vector<2x72xf32>
      %45 = arith.maximumf %43, %44 : vector<2x72xf32>
      %46 = vector.extract_strided_slice %45 {offsets = [0, 0], sizes = [2, 36], strides = [1, 1]} : vector<2x72xf32> to vector<2x36xf32>
      %cst_21 = arith.constant 0.000000e+00 : f32
      %47 = vector.broadcast %cst_21 : f32 to vector<2x14xf32>
      %48 = tpu.concatenate %46, %47 in 1 : vector<2x36xf32>, vector<2x14xf32> -> vector<2x50xf32>
      %49 = vector.extract_strided_slice %45 {offsets = [0, 36], sizes = [2, 36], strides = [1, 1]} : vector<2x72xf32> to vector<2x36xf32>
      %cst_22 = arith.constant 0.000000e+00 : f32
      %50 = vector.broadcast %cst_22 : f32 to vector<2x14xf32>
      %51 = tpu.concatenate %49, %50 in 1 : vector<2x36xf32>, vector<2x14xf32> -> vector<2x50xf32>
      %52 = vector.extract_strided_slice %12 {offsets = [0, 36], sizes = [8, 9], strides = [1, 1]} : vector<16x50xf32> to vector<8x9xf32>
      %53 = vector.extract_strided_slice %12 {offsets = [8, 36], sizes = [8, 9], strides = [1, 1]} : vector<16x50xf32> to vector<8x9xf32>
      %54 = tpu.concatenate %52, %53 in 1 : vector<8x9xf32>, vector<8x9xf32> -> vector<8x18xf32>
      %c1 = arith.constant 1 : index
      %c0_23 = arith.constant 0 : index
      %c0_24 = arith.constant 0 : index
      %55 = vector.load %arg3[%c1, %c0_23, %c0_24] : memref<4x2x8xf32, #tpu.memory_space<vmem>>, vector<1x2x8xf32>
      %56 = vector.shape_cast %55 : vector<1x2x8xf32> to vector<2x8xf32>
      %cst_25 = arith.constant dense<0.000000e+00> : vector<2x18xf32>
      %57 = tpu.matmul %56, %54, %cst_25 {dimension_numbers = #tpu.dot_dimension_numbers<[1], [0], [0], [1], [0, 0, 1, 1], [], []>} : vector<2x8xf32>, vector<8x18xf32>, vector<2x18xf32> -> vector<2x18xf32>
      %cst_26 = arith.constant dense<0.000000e+00> : vector<2xf32>
      %58 = vector.multi_reduction <add>, %57, %cst_26 [1] : vector<2x18xf32> to vector<2xf32>
      %59 = vector.shape_cast %58 : vector<2xf32> to vector<2x1xf32>
      %cst_27 = arith.constant 1.800000e+01 : f32
      %60 = vector.broadcast %cst_27 : f32 to vector<2x1xf32>
      %61 = arith.divf %59, %60 : vector<2x1xf32>
      %62 = vector.broadcast %61 : vector<2x1xf32> to vector<2x18xf32>
      %63 = arith.subf %57, %62 : vector<2x18xf32>
      %64 = arith.mulf %63, %63 : vector<2x18xf32>
      %cst_28 = arith.constant dense<0.000000e+00> : vector<2xf32>
      %65 = vector.multi_reduction <add>, %64, %cst_28 [1] : vector<2x18xf32> to vector<2xf32>
      %66 = vector.shape_cast %65 : vector<2xf32> to vector<2x1xf32>
      %cst_29 = arith.constant 1.800000e+01 : f32
      %67 = vector.broadcast %cst_29 : f32 to vector<2x1xf32>
      %68 = arith.divf %66, %67 : vector<2x1xf32>
      %c1_30 = arith.constant 1 : index
      %c0_31 = arith.constant 0 : index
      %c0_32 = arith.constant 0 : index
      %69 = vector.load %arg4[%c1_30, %c0_31, %c0_32] : memref<4x2x2xf32, #tpu.memory_space<vmem>>, vector<1x2x2xf32>
      %70 = vector.shape_cast %69 : vector<1x2x2xf32> to vector<2x2xf32>
      %71 = vector.extract_strided_slice %70 {offsets = [0, 0], sizes = [2, 1], strides = [1, 1]} : vector<2x2xf32> to vector<2x1xf32>
      %cst_33 = arith.constant 9.99999974E-6 : f32
      %72 = vector.broadcast %cst_33 : f32 to vector<2x1xf32>
      %73 = arith.addf %68, %72 : vector<2x1xf32>
      %74 = math.rsqrt %73 : vector<2x1xf32>
      %75 = arith.mulf %71, %74 : vector<2x1xf32>
      %c1_34 = arith.constant 1 : index
      %c0_35 = arith.constant 0 : index
      %c0_36 = arith.constant 0 : index
      %76 = vector.load %arg4[%c1_34, %c0_35, %c0_36] : memref<4x2x2xf32, #tpu.memory_space<vmem>>, vector<1x2x2xf32>
      %77 = vector.shape_cast %76 : vector<1x2x2xf32> to vector<2x2xf32>
      %78 = vector.extract_strided_slice %77 {offsets = [0, 1], sizes = [2, 1], strides = [1, 1]} : vector<2x2xf32> to vector<2x1xf32>
      %79 = vector.broadcast %75 : vector<2x1xf32> to vector<2x18xf32>
      %80 = arith.mulf %63, %79 : vector<2x18xf32>
      %81 = vector.broadcast %78 : vector<2x1xf32> to vector<2x18xf32>
      %82 = arith.addf %80, %81 : vector<2x18xf32>
      %cst_37 = arith.constant 0.000000e+00 : f32
      %83 = vector.broadcast %cst_37 : f32 to vector<2x18xf32>
      %84 = arith.maximumf %82, %83 : vector<2x18xf32>
      %85 = vector.extract_strided_slice %84 {offsets = [0, 0], sizes = [2, 9], strides = [1, 1]} : vector<2x18xf32> to vector<2x9xf32>
      %cst_38 = arith.constant 0.000000e+00 : f32
      %86 = vector.broadcast %cst_38 : f32 to vector<2x36xf32>
      %cst_39 = arith.constant 0.000000e+00 : f32
      %87 = vector.broadcast %cst_39 : f32 to vector<2x5xf32>
      %88 = tpu.concatenate %86, %85, %87 in 1 : vector<2x36xf32>, vector<2x9xf32>, vector<2x5xf32> -> vector<2x50xf32>
      %89 = vector.extract_strided_slice %84 {offsets = [0, 9], sizes = [2, 9], strides = [1, 1]} : vector<2x18xf32> to vector<2x9xf32>
      %cst_40 = arith.constant 0.000000e+00 : f32
      %90 = vector.broadcast %cst_40 : f32 to vector<2x36xf32>
      %cst_41 = arith.constant 0.000000e+00 : f32
      %91 = vector.broadcast %cst_41 : f32 to vector<2x5xf32>
      %92 = tpu.concatenate %90, %89, %91 in 1 : vector<2x36xf32>, vector<2x9xf32>, vector<2x5xf32> -> vector<2x50xf32>
      %93 = vector.extract_strided_slice %12 {offsets = [0, 45], sizes = [8, 4], strides = [1, 1]} : vector<16x50xf32> to vector<8x4xf32>
      %94 = vector.extract_strided_slice %12 {offsets = [8, 45], sizes = [8, 4], strides = [1, 1]} : vector<16x50xf32> to vector<8x4xf32>
      %95 = tpu.concatenate %93, %94 in 1 : vector<8x4xf32>, vector<8x4xf32> -> vector<8x8xf32>
      %c2 = arith.constant 2 : index
      %c0_42 = arith.constant 0 : index
      %c0_43 = arith.constant 0 : index
      %96 = vector.load %arg3[%c2, %c0_42, %c0_43] : memref<4x2x8xf32, #tpu.memory_space<vmem>>, vector<1x2x8xf32>
      %97 = vector.shape_cast %96 : vector<1x2x8xf32> to vector<2x8xf32>
      %cst_44 = arith.constant dense<0.000000e+00> : vector<2x8xf32>
      %98 = tpu.matmul %97, %95, %cst_44 {dimension_numbers = #tpu.dot_dimension_numbers<[1], [0], [0], [1], [0, 0, 1, 1], [], []>} : vector<2x8xf32>, vector<8x8xf32>, vector<2x8xf32> -> vector<2x8xf32>
      %cst_45 = arith.constant dense<0.000000e+00> : vector<2xf32>
      %99 = vector.multi_reduction <add>, %98, %cst_45 [1] : vector<2x8xf32> to vector<2xf32>
      %100 = vector.shape_cast %99 : vector<2xf32> to vector<2x1xf32>
      %cst_46 = arith.constant 8.000000e+00 : f32
      %101 = vector.broadcast %cst_46 : f32 to vector<2x1xf32>
      %102 = arith.divf %100, %101 : vector<2x1xf32>
      %103 = vector.broadcast %102 : vector<2x1xf32> to vector<2x8xf32>
      %104 = arith.subf %98, %103 : vector<2x8xf32>
      %105 = arith.mulf %104, %104 : vector<2x8xf32>
      %cst_47 = arith.constant dense<0.000000e+00> : vector<2xf32>
      %106 = vector.multi_reduction <add>, %105, %cst_47 [1] : vector<2x8xf32> to vector<2xf32>
      %107 = vector.shape_cast %106 : vector<2xf32> to vector<2x1xf32>
      %cst_48 = arith.constant 8.000000e+00 : f32
      %108 = vector.broadcast %cst_48 : f32 to vector<2x1xf32>
      %109 = arith.divf %107, %108 : vector<2x1xf32>
      %c2_49 = arith.constant 2 : index
      %c0_50 = arith.constant 0 : index
      %c0_51 = arith.constant 0 : index
      %110 = vector.load %arg4[%c2_49, %c0_50, %c0_51] : memref<4x2x2xf32, #tpu.memory_space<vmem>>, vector<1x2x2xf32>
      %111 = vector.shape_cast %110 : vector<1x2x2xf32> to vector<2x2xf32>
      %112 = vector.extract_strided_slice %111 {offsets = [0, 0], sizes = [2, 1], strides = [1, 1]} : vector<2x2xf32> to vector<2x1xf32>
      %cst_52 = arith.constant 9.99999974E-6 : f32
      %113 = vector.broadcast %cst_52 : f32 to vector<2x1xf32>
      %114 = arith.addf %109, %113 : vector<2x1xf32>
      %115 = math.rsqrt %114 : vector<2x1xf32>
      %116 = arith.mulf %112, %115 : vector<2x1xf32>
      %c2_53 = arith.constant 2 : index
      %c0_54 = arith.constant 0 : index
      %c0_55 = arith.constant 0 : index
      %117 = vector.load %arg4[%c2_53, %c0_54, %c0_55] : memref<4x2x2xf32, #tpu.memory_space<vmem>>, vector<1x2x2xf32>
      %118 = vector.shape_cast %117 : vector<1x2x2xf32> to vector<2x2xf32>
      %119 = vector.extract_strided_slice %118 {offsets = [0, 1], sizes = [2, 1], strides = [1, 1]} : vector<2x2xf32> to vector<2x1xf32>
      %120 = vector.broadcast %116 : vector<2x1xf32> to vector<2x8xf32>
      %121 = arith.mulf %104, %120 : vector<2x8xf32>
      %122 = vector.broadcast %119 : vector<2x1xf32> to vector<2x8xf32>
      %123 = arith.addf %121, %122 : vector<2x8xf32>
      %cst_56 = arith.constant 0.000000e+00 : f32
      %124 = vector.broadcast %cst_56 : f32 to vector<2x8xf32>
      %125 = arith.maximumf %123, %124 : vector<2x8xf32>
      %126 = vector.extract_strided_slice %125 {offsets = [0, 0], sizes = [2, 4], strides = [1, 1]} : vector<2x8xf32> to vector<2x4xf32>
      %cst_57 = arith.constant 0.000000e+00 : f32
      %127 = vector.broadcast %cst_57 : f32 to vector<2x45xf32>
      %cst_58 = arith.constant 0.000000e+00 : f32
      %128 = vector.broadcast %cst_58 : f32 to vector<2x1xf32>
      %129 = tpu.concatenate %127, %126, %128 in 1 : vector<2x45xf32>, vector<2x4xf32>, vector<2x1xf32> -> vector<2x50xf32>
      %130 = vector.extract_strided_slice %125 {offsets = [0, 4], sizes = [2, 4], strides = [1, 1]} : vector<2x8xf32> to vector<2x4xf32>
      %cst_59 = arith.constant 0.000000e+00 : f32
      %131 = vector.broadcast %cst_59 : f32 to vector<2x45xf32>
      %cst_60 = arith.constant 0.000000e+00 : f32
      %132 = vector.broadcast %cst_60 : f32 to vector<2x1xf32>
      %133 = tpu.concatenate %131, %130, %132 in 1 : vector<2x45xf32>, vector<2x4xf32>, vector<2x1xf32> -> vector<2x50xf32>
      %134 = vector.extract_strided_slice %12 {offsets = [0, 49], sizes = [8, 1], strides = [1, 1]} : vector<16x50xf32> to vector<8x1xf32>
      %135 = vector.extract_strided_slice %12 {offsets = [8, 49], sizes = [8, 1], strides = [1, 1]} : vector<16x50xf32> to vector<8x1xf32>
      %136 = tpu.concatenate %134, %135 in 1 : vector<8x1xf32>, vector<8x1xf32> -> vector<8x2xf32>
      %c3 = arith.constant 3 : index
      %c0_61 = arith.constant 0 : index
      %c0_62 = arith.constant 0 : index
      %137 = vector.load %arg3[%c3, %c0_61, %c0_62] : memref<4x2x8xf32, #tpu.memory_space<vmem>>, vector<1x2x8xf32>
      %138 = vector.shape_cast %137 : vector<1x2x8xf32> to vector<2x8xf32>
      %cst_63 = arith.constant dense<0.000000e+00> : vector<2x2xf32>
      %139 = tpu.matmul %138, %136, %cst_63 {dimension_numbers = #tpu.dot_dimension_numbers<[1], [0], [0], [1], [0, 0, 1, 1], [], []>} : vector<2x8xf32>, vector<8x2xf32>, vector<2x2xf32> -> vector<2x2xf32>
      %cst_64 = arith.constant dense<0.000000e+00> : vector<2xf32>
      %140 = vector.multi_reduction <add>, %139, %cst_64 [1] : vector<2x2xf32> to vector<2xf32>
      %141 = vector.shape_cast %140 : vector<2xf32> to vector<2x1xf32>
      %cst_65 = arith.constant 2.000000e+00 : f32
      %142 = vector.broadcast %cst_65 : f32 to vector<2x1xf32>
      %143 = arith.divf %141, %142 : vector<2x1xf32>
      %144 = vector.broadcast %143 : vector<2x1xf32> to vector<2x2xf32>
      %145 = arith.subf %139, %144 : vector<2x2xf32>
      %146 = arith.mulf %145, %145 : vector<2x2xf32>
      %cst_66 = arith.constant dense<0.000000e+00> : vector<2xf32>
      %147 = vector.multi_reduction <add>, %146, %cst_66 [1] : vector<2x2xf32> to vector<2xf32>
      %148 = vector.shape_cast %147 : vector<2xf32> to vector<2x1xf32>
      %cst_67 = arith.constant 2.000000e+00 : f32
      %149 = vector.broadcast %cst_67 : f32 to vector<2x1xf32>
      %150 = arith.divf %148, %149 : vector<2x1xf32>
      %c3_68 = arith.constant 3 : index
      %c0_69 = arith.constant 0 : index
      %c0_70 = arith.constant 0 : index
      %151 = vector.load %arg4[%c3_68, %c0_69, %c0_70] : memref<4x2x2xf32, #tpu.memory_space<vmem>>, vector<1x2x2xf32>
      %152 = vector.shape_cast %151 : vector<1x2x2xf32> to vector<2x2xf32>
      %153 = vector.extract_strided_slice %152 {offsets = [0, 0], sizes = [2, 1], strides = [1, 1]} : vector<2x2xf32> to vector<2x1xf32>
      %cst_71 = arith.constant 9.99999974E-6 : f32
      %154 = vector.broadcast %cst_71 : f32 to vector<2x1xf32>
      %155 = arith.addf %150, %154 : vector<2x1xf32>
      %156 = math.rsqrt %155 : vector<2x1xf32>
      %157 = arith.mulf %153, %156 : vector<2x1xf32>
      %c3_72 = arith.constant 3 : index
      %c0_73 = arith.constant 0 : index
      %c0_74 = arith.constant 0 : index
      %158 = vector.load %arg4[%c3_72, %c0_73, %c0_74] : memref<4x2x2xf32, #tpu.memory_space<vmem>>, vector<1x2x2xf32>
      %159 = vector.shape_cast %158 : vector<1x2x2xf32> to vector<2x2xf32>
      %160 = vector.extract_strided_slice %159 {offsets = [0, 1], sizes = [2, 1], strides = [1, 1]} : vector<2x2xf32> to vector<2x1xf32>
      %161 = vector.broadcast %157 : vector<2x1xf32> to vector<2x2xf32>
      %162 = arith.mulf %145, %161 : vector<2x2xf32>
      %163 = vector.broadcast %160 : vector<2x1xf32> to vector<2x2xf32>
      %164 = arith.addf %162, %163 : vector<2x2xf32>
      %cst_75 = arith.constant 0.000000e+00 : f32
      %165 = vector.broadcast %cst_75 : f32 to vector<2x2xf32>
      %166 = arith.maximumf %164, %165 : vector<2x2xf32>
      %167 = vector.extract_strided_slice %166 {offsets = [0, 0], sizes = [2, 1], strides = [1, 1]} : vector<2x2xf32> to vector<2x1xf32>
      %cst_76 = arith.constant 0.000000e+00 : f32
      %168 = vector.broadcast %cst_76 : f32 to vector<2x49xf32>
      %169 = tpu.concatenate %168, %167 in 1 : vector<2x49xf32>, vector<2x1xf32> -> vector<2x50xf32>
      %170 = vector.extract_strided_slice %166 {offsets = [0, 1], sizes = [2, 1], strides = [1, 1]} : vector<2x2xf32> to vector<2x1xf32>
      %cst_77 = arith.constant 0.000000e+00 : f32
      %171 = vector.broadcast %cst_77 : f32 to vector<2x49xf32>
      %172 = tpu.concatenate %171, %170 in 1 : vector<2x49xf32>, vector<2x1xf32> -> vector<2x50xf32>
      %173 = tpu.concatenate %48, %88, %129, %169, %51, %92, %133, %172 in 0 : vector<2x50xf32>, vector<2x50xf32>, vector<2x50xf32>, vector<2x50xf32>, vector<2x50xf32>, vector<2x50xf32>, vector<2x50xf32>, vector<2x50xf32> -> vector<16x50xf32>
      %c0_78 = arith.constant 0 : index
      %c0_79 = arith.constant 0 : index
      %174 = vector.load %arg8[%c0_78, %c0_79] : memref<16x50xf32, #tpu.memory_space<vmem>>, vector<16x50xf32>
      tpu.vector_store %arg8[%c0_78, %c0_79], %173 {strides = array<i32>} : memref<16x50xf32, #tpu.memory_space<vmem>>, vector<16x50xf32>,
    } else {
    }
    %c2_i32_3 = arith.constant 2 : i32
    %9 = arith.cmpi sge, %arg0, %c2_i32_3 : i32
    %10 = arith.extui %9 : i1 to i32
    %c0_i32_4 = arith.constant 0 : i32
    %11 = arith.cmpi ne, %10, %c0_i32_4 : i32
    scf.if %11 {
      %c0 = arith.constant 0 : index
      %c0_5 = arith.constant 0 : index
      %12 = vector.load %arg8[%c0, %c0_5] : memref<16x50xf32, #tpu.memory_space<vmem>>, vector<16x50xf32>
      %c0_6 = arith.constant 0 : index
      %c0_7 = arith.constant 0 : index
      %13 = vector.load %arg5[%c0_6, %c0_7] : memref<50x128xf32, #tpu.memory_space<vmem>>, vector<50x128xf32>
      %cst = arith.constant dense<0.000000e+00> : vector<16x128xf32>
      %14 = tpu.matmul %12, %13, %cst {dimension_numbers = #tpu.dot_dimension_numbers<[1], [0], [0], [1], [0, 0, 1, 1], [], []>} : vector<16x50xf32>, vector<50x128xf32>, vector<16x128xf32> -> vector<16x128xf32>
      %15 = vector.shape_cast %14 : vector<16x128xf32> to vector<2x8x128xf32>
      %c0_8 = arith.constant 0 : index
      %c0_9 = arith.constant 0 : index
      %c0_10 = arith.constant 0 : index
      %16 = vector.load %arg6[%c0_8, %c0_9, %c0_10] : memref<2x8x128xf32, #tpu.memory_space<vmem>>, vector<2x8x128xf32>
      tpu.vector_store %arg6[%c0_8, %c0_9, %c0_10], %15 {strides = array<i32>} : memref<2x8x128xf32, #tpu.memory_space<vmem>>, vector<2x8x128xf32>,
    } else {
    }
    return
  }
  func.func @transform_0(%arg0: i32) -> (i32, i32, i32) {
    %c1_i32 = arith.constant 1 : i32
    %0 = arith.minsi %arg0, %c1_i32 : i32
    %c0_i32 = arith.constant 0 : i32
    %c0_i32_0 = arith.constant 0 : i32
    %c0_i32_1 = arith.constant 0 : i32
    return %c0_i32, %c0_i32_0, %0 : i32, i32, i32
  }
  func.func @transform_1(%arg0: i32) -> (i32, i32) {
    %c1_i32 = arith.constant 1 : i32
    %0 = arith.minsi %arg0, %c1_i32 : i32
    %c0_i32 = arith.constant 0 : i32
    %c0_i32_0 = arith.constant 0 : i32
    return %0, %c0_i32 : i32, i32
  }
  func.func @transform_2(%arg0: i32) -> (i32, i32, i32) {
    %c0_i32 = arith.constant 0 : i32
    %c0_i32_0 = arith.constant 0 : i32
    %c0_i32_1 = arith.constant 0 : i32
    %c0_i32_2 = arith.constant 0 : i32
    return %c0_i32, %c0_i32_0, %c0_i32_1 : i32, i32, i32
  }
  func.func @transform_3(%arg0: i32) -> (i32, i32, i32) {
    %c0_i32 = arith.constant 0 : i32
    %c0_i32_0 = arith.constant 0 : i32
    %c0_i32_1 = arith.constant 0 : i32
    %c0_i32_2 = arith.constant 0 : i32
    return %c0_i32, %c0_i32_0, %c0_i32_1 : i32, i32, i32
  }
  func.func @transform_4(%arg0: i32) -> (i32, i32) {
    %c2_i32 = arith.constant 2 : i32
    %0 = arith.subi %arg0, %c2_i32 : i32
    %c0_i32 = arith.constant 0 : i32
    %1 = arith.maxsi %0, %c0_i32 : i32
    %c0_i32_0 = arith.constant 0 : i32
    %c0_i32_1 = arith.constant 0 : i32
    return %c0_i32_0, %1 : i32, i32
  }
  func.func @transform_5(%arg0: i32) -> (i32, i32, i32) {
    %c2_i32 = arith.constant 2 : i32
    %0 = arith.cmpi slt, %arg0, %c2_i32 : i32
    %c0_i32 = arith.constant 0 : i32
    %c1_i32 = arith.constant 1 : i32
    %1 = arith.select %0, %c0_i32, %c1_i32 : i32
    %c2_i32_0 = arith.constant 2 : i32
    %2 = arith.muli %1, %c2_i32_0 : i32
    %3 = arith.subi %arg0, %2 : i32
    %c0_i32_1 = arith.constant 0 : i32
    %c0_i32_2 = arith.constant 0 : i32
    return %c0_i32_1, %1, %3 : i32, i32, i32
  }
}

</mosaic_0001>

<bundles_post_ra>
// kernel: tpu_custom_call.1
= control target key start
LH: loop header
LB: loop body
LE: loop exit
PB: predicated region body
PF: predicated region fallthrough
CT: control target
= control target key end

     0   :  { %s1999_s0 = inlined_call_operand.vmem [shape: f32[2,8,256], index: 0, kind: input, shape index: {}]   ;;  %s2000_s1 = inlined_call_operand.vmem [shape: f32[256,50], index: 1, kind: input, shape index: {}]   ;;  %s2001_s2 = inlined_call_operand.vmem [shape: f32[4,2,8], index: 2, kind: input, shape index: {}]   ;;  %s2002_s3 = inlined_call_operand.vmem [shape: f32[4,2,2], index: 3, kind: input, shape index: {}]   ;;  %s2003_s4 = inlined_call_operand.vmem [shape: f32[50,256], index: 4, kind: input, shape index: {}]   ;;  %s2004_s5 = inlined_call_operand.hbm [shape: f32[2,16,256], index: 5, kind: output, shape index: {}]  }
   0x1   :  { %2008 = sst [smem:[#allocation11_spill]] %s2001_s2 }
   0x2   :  { %2009 = sst [smem:[#allocation12_spill]] %s2002_s3 }
   0x3   :  { %2010 = sst [smem:[#allocation13_spill]] %s2004_s5 }
   0x4   :  { %10 = vsyncpa [#allocation7], 0 }
   0x5   :  { %12 = vsyncpa [#allocation7 + $0x1], 0  ;;  %s1666_s18 = smov 0   ;;  %s1668_s19 = smov 0  }
   0x6   :  { %s1670_s20 = smov 0   ;;  %s1672_s21 = smov 0  }
   0x7   :  { %s1674_s22 = smov 0   ;;  %s1676_s23 = smov 0  }
   0x8   :  { %s1678_s24 = smov 0   ;;  %s1680_s25 = smov 0  }
   0x9 LB: > { %s1707_s26 = sadd.s32 4294967294, %s1613_s25   ;;  %s1710_s27 = sadd.s32 1, %s1613_s25   ;;  %s1613_s25 = sphi %s1680_s25, %s2029_s25   ;;  %s1609_s24 = sphi %s1678_s24, %s2028_s24   ;;  %s1605_s23 = sphi %s1676_s23, %s2027_s23   ;;  %s1601_s22 = sphi %s1674_s22, %s2026_s22   ;;  %s1597_s21 = sphi %s1672_s21, %s2025_s21   ;;  %s1593_s20 = sphi %s1670_s20, %s2024_s20   ;;  %s1589_s19 = sphi %s1668_s19, %s2023_s19   ;;  %s1585_s18 = sphi %s1666_s18, %s2022_s18  }
   0xa   : > { %p22_p0 = scmp.lt.s32.totalorder %s1613_s25, 1  ;;  %p24_p1 = scmp.lt.s32.totalorder %s1710_s27, 1 }
   0xb   : > { %s29_s28 = sadd.s32 1, %s1609_s24  ;;  %p36_p2 = scmp.ne.s32.totalorder %s1609_s24, %s1605_s23 }
   0xc   : > { %s1716_s29 = scalar_select %p22_p0, %s1613_s25, 1 }
   0xd   : > { %s25_s30 = scalar_select %p24_p1, %s1710_s27, 1 }
   0xe   : > { %p37_p3 = scmp.eq.s32.totalorder %s1613_s25, 0  ;;  %p125_p4 = scmp.gt.s32.totalorder %s1707_s26, 0 }
   0xf   : > { %s26_s6 = ssub.s32 %s1716_s29, %s25_s30  ;;  %s1737_s10 = sadd.s32 4294967295, %s1613_s25  }
  0x10   : > { %p27_p5 = scmp.eq.s32.totalorder %s26_s6, 0  ;;  %p1726_p6 = por %p37_p3, %p36_p2 }
  0x11   : > { %s1731_s8 = scalar_select %p125_p4, %s1707_s26, 0 }
  0x12   : > { %s1734_s9 = scalar_select %p27_p5, %s1609_s24, %s29_s28  }
  0x13   : > { %s1271_s11 = sadd.s32 4294967294, %s1710_s27  ;;  %p140_p8 = scmp.ne.s32.totalorder %s1601_s22, %s1597_s21 }
  0x14   : > { %2012 = sst [smem:[#allocation9_spill]] %s1734_s9  ;;  %p128_p7 = scmp.gt.s32.totalorder %s1271_s11, 0 }
  0x15   : > { %s133_s12 = sadd.s32 1, %s1601_s22  ;;  %p156_p9 = scmp.ge.s32.totalorder %s1613_s25, 2 }
  0x16   : > { %s2031_s11 = smov (!%p128_p7, %s1271_s11), 0  ;;  %p1746_p10 = por %p140_p8, %p37_p3 }
  0x17   : > { %p160_p11 = scmp.ge.s32.totalorder %s1710_s27, 2  ;;  %s130_s14 = ssub.s32 %s1731_s8, %s2031_s11 }
  0x18   : > { %p179_p12 = scmp.ne.s32.totalorder %s1593_s20, %s1589_s19  ;;  %p131_p13 = scmp.eq.s32.totalorder %s130_s14, 0 }
  0x19   : > { %p180_p0 = scmp.eq.s32.totalorder %s1737_s10, 3  ;;  %p185_p2 = scmp.ne.s32.totalorder %s1589_s19, %s1585_s18 }
  0x1a   : > { %s157_s15 = scalar_select %p156_p9, 1, 0 }
  0x1b   : > { %s1758_s16 = scalar_select %p131_p13, %s1601_s22, %s133_s12  }
  0x1c   : > { %s1272_s17 = sshll.u32 %s157_s15, 1  ;;  %p1760_p1 = por %p180_p0, %p179_p12 }
  0x1d   : > { %2014 = sst [smem:[#allocation10_spill]] %s1758_s16  ;;  %s159_s6 = ssub.s32 %s1613_s25, %s1272_s17 }
  0x1e   : > { %s161_s30 = scalar_select %p160_p11, 1, 0 }
  0x1f   : > { %p186_p3 = scmp.eq.s32.totalorder %s1707_s26, 3  ;;  %s169_s12 = sadd.s32 1, %s1593_s20 }
  0x20   : > { %s1273_s9 = sshll.u32 %s161_s30, 1  ;;  %s164_s11 = ssub.s32 %s157_s15, %s161_s30 }
  0x21   : > { %s163_s5 = ssub.s32 %s1710_s27, %s1273_s9  ;;  %p1769_p4 = por %p186_p3, %p185_p2 }
  0x22   : > { %s165_s3 = ssub.s32 %s159_s6, %s163_s5  ;;  %p1275_p7 = scmp.ge.s32.totalorder %s1613_s25, 4 }
  0x23   : > { %s166_s2 = sor.u32 %s165_s3, %s164_s11 }
  0x24   : > { %p167_p5 = scmp.eq.s32.totalorder %s166_s2, 0  ;;  %208 = sbr.rel (%p1275_p7) target bundleno = 54 (0x36), region = 24 }
  0x26   : > { %s1775_s16 = scalar_select %p167_p5, %s1593_s20, %s169_s12  }
  0x29   : > { %211 = sbr.rel (!%p1726_p6) target bundleno = 46 (0x2e), region = 28  ;;  %s213_s26 = sand.u32 (%p1726_p6), 1, %s1609_s24  }
  0x2a   : > { %s1277_s9 = sshll.u32 (%p1726_p6), %s1716_s29, 3  ;;  %s1276_s15 = sshll.u32 (%p1726_p6), %s213_s26, 4 }
  0x2b   : > { %s219_s5 = scalar_lea.vmem (%p1726_p6), %s1999_s0, %s1277_s9  ;;  %s215_s2 = scalar_lea.vmem (%p1726_p6), [#allocation4], %s1276_s15 }
  0x2c   : > { %v250_v0 = vld [vmem:[%s219_s5] sm:$0xff] (%p1726_p6)  ;;  %v252_v1 = vld [vmem:[%s219_s5 + $0x10] sm:$0xff] (%p1726_p6) }
  0x2d   : > { %251 = vst [vmem:[%s215_s2] sm:$0xff] (%p1726_p6), %v250_v0  ;;  %253 = vst [vmem:[%s215_s2 + $0x8] sm:$0xff] (%p1726_p6), %v252_v1 }
  0x2e PF: > { %272 = sbr.rel (!%p1746_p10) target bundleno = 54 (0x36), region = 70  ;;  %s274_s3 = sand.u32 (%p1746_p10), 1, %s1601_s22  }
  0x2f   : > { %s1279_s7 = sshll.u32 (%p1746_p10), %s1731_s8, 3  ;;  %s1415_s6 = smul.u32 (%p1746_p10), 56, %s274_s3 }
  0x30   : > { %s281_s12 = scalar_lea.vmem (%p1746_p10), %s2003_s4, %s1279_s7 }
  0x31   : > { %v322_v2 = vld [vmem:[%s281_s12] sm:$0xff] (%p1746_p10)  ;;  %v324_v3 = vld [vmem:[%s281_s12 + $0x10] sm:$0xff] (%p1746_p10)  ;;  %s276_s26 = scalar_lea.vmem (%p1746_p10), [#allocation5], %s1415_s6 }
  0x32   : > { %v326_v4 = vld [vmem:[%s281_s12 + $0x20] sm:$0xff] (%p1746_p10)  ;;  %v328_v5 = vld [vmem:[%s281_s12 + $0x30] sm:$0xff] (%p1746_p10)  ;;  %323 = vst [vmem:[%s276_s26] sm:$0xff] (%p1746_p10), %v322_v2  ;;  %325 = vst [vmem:[%s276_s26 + $0x8] sm:$0xff] (%p1746_p10), %v324_v3 }
  0x33   : > { %v330_v6 = vld [vmem:[%s281_s12 + $0x40] sm:$0xff]  ;;  %v332_v7 = vld [vmem:[%s281_s12 + $0x50] sm:$0xff]  ;;  %327 = vst [vmem:[%s276_s26 + $0x10] sm:$0xff] %v326_v4  ;;  %329 = vst [vmem:[%s276_s26 + $0x18] sm:$0xff] %v328_v5 }
  0x34   : > { %331 = vst [vmem:[%s276_s26 + $0x20] sm:$0xff] %v330_v6  ;;  %333 = vst [vmem:[%s276_s26 + $0x28] sm:$0xff] %v332_v7  ;;  %v334_v8 = vld [vmem:[%s281_s12 + $0x60] sm:$0xff] }
  0x35   : > { %335 = vst [vmem:[%s276_s26 + $0x30] sm:$0xff] %v334_v8 }
  0x36 PF: > { %p1280_p6 = scmp.ge.s32.totalorder %s1613_s25, 1  ;;  %p340_p8 = scmp.lt.s32.totalorder %s1613_s25, 5 }
  0x38   : > { %p341_p10 = pnand %p1280_p6, %p340_p8 }
  0x39   : > { %s347_s8 = sand.u32 (!%p341_p10), 1, %s1605_s23   ;;  %s354_s13 = sand.u32 (!%p341_p10), 1, %s1597_s21  }
  0x3a   : > { %344 = sbr.rel (%p341_p10) target bundleno = 1455 (0x5af), region = 108  ;;  %s1796_s9 = sshll.u32 (!%p341_p10), %s347_s8, 4 }
  0x3b   : > { %s1416_s15 = smul.u32 (!%p341_p10), 56, %s354_s13  ;;  %s389_s17 = sand.u32 (!%p341_p10), 1, %s1589_s19  }
  0x3c   : > { %s1282_s30 = sshll.u32 (!%p341_p10), %s389_s17, 4  ;;  %p394_p11 = scmp.lt.s32.totalorder (!%p341_p10), %s1737_s10, 1 }
  0x3d   : > { %s349_s23 = scalar_lea.vmem (!%p341_p10), [#allocation4], %s1796_s9  ;;  %s1809_s21 = scalar_lea.vmem (!%p341_p10), [#allocation5], %s1416_s15 }
  0x3e   : > { %s1811_s11 = scalar_lea.vmem (!%p341_p10), [#allocation6], %s1282_s30  ;;  %p1285_p13 = scmp.ne.s32.totalorder (!%p341_p10), %s1737_s10, 0 }
  0x3f   : > { %s395_s5 = scalar_select %p394_p11, %s1737_s10, 1 }
  0x41   : > { %s1283_s2 = sshll.u32 %s395_s5, 4 }
  0x42   : > { %p397_p12 = scmp.lt.s32.totalorder %s1283_s2, 31  ;;  %414 = sbr.rel (%p1285_p13) target bundleno = 73 (0x49), region = 120 }
  0x44   : > { %s2033_s2 = smov (!%p397_p12, %s1283_s2), 31 }
  0x45   : > { %s1284_s3 = sshll.u32 %s2033_s2, 3 }
  0x46   : > { %s1806_s29 = scalar_lea.vmem %s2000_s1, %s1284_s3 }
  0x47   : > { %vm415_vm0 = vcmask 408576   ;;  %v1615_v9 = vmov 0.0  }
  0x48   : > { %416 = vst.msk [vmem:[#allocation2] sm:$0xff] %vm415_vm0, %v1615_v9  ;;  %417 = vst.msk [vmem:[#allocation2 + $0x8] sm:$0xff] %vm415_vm0, %v1615_v9 }
  0x49 PF: > { %p1286_p0 = scmp.ge.s32.totalorder %s1737_s10, 2 }
  0x4b   : > { %421 = sbr.rel (%p1286_p0) target bundleno = 311 (0x137), region = 124 }
  0x50   : > { %v441_v10 = vld [vmem:[%s1806_s29 + $0x78] sm:$0xff]  ;;  %v440_v11 = vld [vmem:[%s1806_s29 + $0x70] sm:$0xff]  ;;  %v439_v12 = vld [vmem:[%s1806_s29 + $0x68] sm:$0xff]  ;;  %vm521_vm1 = vcmask 408576  }
  0x51   : > { %1343 = vmatprep.subr.mxu0 %v441_v10  ;;  %v438_v13 = vld [vmem:[%s1806_s29 + $0x60] sm:$0xff]  ;;  %v423_v15 = vld [vmem:[%s349_s23 + $0x8] sm:$0xff]  ;;  %v436_v17 = vld [vmem:[%s1806_s29 + $0x50] sm:$0xff] }
  0x52   : > { %1344 = vmatpush3.msra.mxu0 %v441_v10  ;;  %v422_v14 = vld [vmem:[%s349_s23] sm:$0xff]  ;;  %v437_v16 = vld [vmem:[%s1806_s29 + $0x58] sm:$0xff]  ;;  %425 = vst [vmem:[%s1811_s11 + $0x8] sm:$0xff] %v423_v15  ;;  %v435_v18 = vld [vmem:[%s1806_s29 + $0x48] sm:$0xff] }
  0x53   : > { %1345 = vmatprep.subr.mxu0 %v440_v11  ;;  %424 = vst [vmem:[%s1811_s11] sm:$0xff] %v422_v14  ;;  %1375 = vmatprep.mubr.f32.mxu0 %v422_v14  ;;  %v434_v19 = vld [vmem:[%s1806_s29 + $0x40] sm:$0xff]  ;;  %v433_v20 = vld [vmem:[%s1806_s29 + $0x38] sm:$0xff]  ;;  %v432_v21 = vld [vmem:[%s1806_s29 + $0x30] sm:$0xff] }
  0x54   : > { %1346 = vmatpush3.msra.mxu0 %v440_v11  ;;  %v431_v22 = vld [vmem:[%s1806_s29 + $0x28] sm:$0xff]  ;;  %v430_v23 = vld [vmem:[%s1806_s29 + $0x20] sm:$0xff]  ;;  %v429_v24 = vld [vmem:[%s1806_s29 + $0x18] sm:$0xff] }
  0x55   : > { %1347 = vmatprep.subr.mxu0 %v439_v12  ;;  %v428_v25 = vld [vmem:[%s1806_s29 + $0x10] sm:$0xff]  ;;  %v427_v26 = vld [vmem:[%s1806_s29 + $0x8] sm:$0xff]  ;;  %v426_v27 = vld [vmem:[%s1806_s29] sm:$0xff] }
  0x56   : > { %1348 = vmatpush3.msra.mxu0 %v439_v12  ;;  %v443_v28 = vld [vmem:[#allocation2 + $0x8] sm:$0xff]  ;;  %v442_v30 = vld [vmem:[#allocation2] sm:$0xff] }
  0x57   : > { %1349 = vmatprep.subr.mxu0 %v438_v13 }
  0x58   : > { %1350 = vmatpush3.msra.mxu0 %v438_v13 }
  0x59   : > { %1351 = vmatprep.subr.mxu0 %v437_v16 }
  0x5a   : > { %1352 = vmatpush3.msra.mxu0 %v437_v16 }
  0x5b   : > { %1353 = vmatprep.subr.mxu0 %v436_v17 }
  0x5c   : > { %1354 = vmatpush3.msra.mxu0 %v436_v17 }
  0x5d   : > { %1355 = vmatprep.subr.mxu0 %v435_v18 }
  0x5e   : > { %1356 = vmatpush3.msra.mxu0 %v435_v18 }
  0x5f   : > { %1357 = vmatprep.subr.mxu0 %v434_v19 }
  0x60   : > { %1358 = vmatpush3.msra.mxu0 %v434_v19 }
  0x61   : > { %1359 = vmatprep.subr.mxu0 %v433_v20 }
  0x62   : > { %1360 = vmatpush3.msra.mxu0 %v433_v20 }
  0x63   : > { %1361 = vmatprep.subr.mxu0 %v432_v21 }
  0x64   : > { %1362 = vmatpush3.msra.mxu0 %v432_v21 }
  0x65   : > { %1363 = vmatprep.subr.mxu0 %v431_v22 }
  0x66   : > { %1364 = vmatpush3.msra.mxu0 %v431_v22 }
  0x67   : > { %1365 = vmatprep.subr.mxu0 %v430_v23 }
  0x68   : > { %1366 = vmatpush3.msra.mxu0 %v430_v23 }
  0x69   : > { %1367 = vmatprep.subr.mxu0 %v429_v24 }
  0x6a   : > { %1368 = vmatpush3.msra.mxu0 %v429_v24 }
  0x6b   : > { %1369 = vmatprep.subr.mxu0 %v428_v25 }
  0x6c   : > { %1370 = vmatpush3.msra.mxu0 %v428_v25 }
  0x6d   : > { %1371 = vmatprep.subr.mxu0 %v427_v26 }
  0x6e   : > { %1372 = vmatpush3.msra.mxu0 %v427_v26 }
  0x6f   : > { %1373 = vmatprep.subr.mxu0 %v426_v27 }
  0x70   : > { %1374 = vmatpush3.msra.mxu0 %v426_v27 }
  0x71   : > { %1376 = vmatmul.mubr.f32.vlgmr.msra.gmra.mxu0 %v423_v15 }
 0x131   : > { %v1377_v29 = vpop.f32.mrf.mxu0 }
 0x132   : > { %v520_v31 = vadd.f32 %v1377_v29, %v443_v28 }
 0x133   : > { %v510_v32 = vpop.f32.mrf.mxu0 }
 0x134   : > { %523 = vst.msk [vmem:[#allocation2 + $0x8] sm:$0xff] %vm521_vm1, %v520_v31  ;;  %v519_v33 = vadd.f32 %v510_v32, %v442_v30 }
 0x136   : > { %522 = vst.msk [vmem:[#allocation2] sm:$0xff] %vm521_vm1, %v519_v33 }
 0x137 PF: > { %p1287_p2 = scmp.ne.s32.totalorder %s1737_s10, 1 }
 0x138   : > { %s1616_s12 = smov (!%p1287_p2), 36   ;;  %s1617_s26 = smov (!%p1287_p2), 101  }
 0x139   : > { %527 = sbr.rel (%p1287_p2) target bundleno = 1208 (0x4b8), region = 128  ;;  %s1620_s8 = smov (!%p1287_p2), 92  }
 0x13a   : > { %s1621_s13 = smov (!%p1287_p2), 83   ;;  %s1622_s9 = smov (!%p1287_p2), 87  }
 0x13b   : > { %s1623_s15 = smov (!%p1287_p2), 79   ;;  %s1624_s30 = smov (!%p1287_p2), 80  }
 0x13c   : > { %s2017_s3 = sld [smem:[#allocation11_spill]] (!%p1287_p2) }
 0x13e   : > { %v529_v34 = vld [vmem:[#allocation2 + $0x8] sm:$0xff]  ;;  %v528_v35 = vld [vmem:[#allocation2] sm:$0xff]  ;;  %v1618_v36 = vmov 0.0   ;;  %vm1619_vm2 = vmmov 0   ;;  %vm534_vm3 = vcmask 293888   ;;  %vm537_vm4 = vcmask 64512  }
 0x13f   : > { %531 = vrot.lane.b32.xlu0 %v529_v34, %s1616_s12  ;;  %650 = vrot.lane.b32.xlu1 %v529_v34, %s1617_s26  ;;  %vm653_vm5 = vcmask 72704   ;;  %vm778_vm6 = vcmask 31744   ;;  %vm903_vm7 = vcmask 7168   ;;  %vm730_vm8 = vcmask 140288   ;;  %s1627_s26 = smov 45  }
 0x140   : > { %1378 = vmatprep.subr.mxu0 %v1618_v36  ;;  %1383 = vmatprep.subr.mxu1 %v1618_v36  ;;  %vm855_vm9 = vcmask 58368   ;;  %vm980_vm10 = vcmask 9216   ;;  %vm611_vm11 = vcmask 582656   ;;  %v1625_v20 = vmov 1  }
 0x141   : > { %1380 = vmatprep.mubr.msk.f32.mxu0 %vm1619_vm2, %v1618_v36  ;;  %1385 = vmatprep.mubr.msk.f32.mxu1 %vm1619_vm2, %v1618_v36  ;;  %v1626_v24 = vmov 0   ;;  %vm765_vm12 = vcmask 367616   ;;  %vm890_vm13 = vcmask 400384   ;;  %vm1037_vm14 = vcmask 1041408  }
 0x142   : > { %v536_v39 = vld [vmem:[%s2017_s3] sm:$0x3]  ;;  %v1289_v42 = vld [vmem:[%s2017_s3 + $0x2] sm:$0x3]  ;;  %v1292_v46 = vld [vmem:[%s2017_s3 + $0x4] sm:$0x3]  ;;  %1509 = vset.pattern.permute.xlu1 %v1625_v20  ;;  %1508 = vset.pattern.permute.xlu0 %v1626_v24 }
 0x143   : > { %647 = vrot.lane.b32.xlu0 %v528_v35, %s1620_s8  ;;  %772 = vrot.lane.b32.xlu1 %v528_v35, %s1621_s13  ;;  %v1295_v50 = vld [vmem:[%s2017_s3 + $0x6] sm:$0x3]  ;;  %s1628_s13 = smov 49   ;;  %vm1039_vm15 = vcmask 1043456   ;;  %vm1041_vm0 = vcmask 1045504   ;;  %vm1046_vm1 = vcmask 408576  }
 0x147   : > { %775 = vrot.lane.b32.xlu0 %v529_v34, %s1622_s9  ;;  %897 = vrot.lane.b32.xlu1 %v528_v35, %s1623_s15  ;;  %s1629_s9 = smov 27   ;;  %s1631_s15 = smov 48  }
 0x14b   : > { %900 = vrot.lane.b32.xlu0 %v529_v34, %s1624_s30  ;;  %s2018_s30 = sld [smem:[#allocation12_spill]] }
 0x151   : > { %v623_v21 = vld [vmem:[%s2018_s30] sm:$0x3]  ;;  %v1291_v22 = vld [vmem:[%s2018_s30 + $0x2] sm:$0x3]  ;;  %v1294_v23 = vld [vmem:[%s2018_s30 + $0x4] sm:$0x3] }
 0x1b1   : > { %v532_v37 = vpop.permute.xlu0 %531  ;;  %v651_v38 = vpop.permute.xlu1 %650 }
 0x1b2   : > { %v535_v40 = vsel %vm534_vm3, %v528_v35, %v532_v37 }
 0x1b3   : > { %1379 = vmatpush3.msra.mxu0 %v535_v40 }
 0x1b4   : > { %1381 = vmatmul.mubr.msk.f32.vlgmr.msra.gmra.mxu0 %vm537_vm4, %v536_v39  ;;  %1388 = vmatprep.subr.mxu0 %v1618_v36 }
 0x1b5   : > { %v648_v41 = vpop.permute.xlu0 %647  ;;  %v773_v43 = vpop.permute.xlu1 %772  ;;  %1390 = vmatprep.mubr.msk.f32.mxu0 %vm1619_vm2, %v1618_v36 }
 0x1b6   : > { %v654_v44 = vsel %vm653_vm5, %v648_v41, %v651_v38  ;;  %v1297_v41 = vld [vmem:[%s2018_s30 + $0x6] sm:$0x3] }
 0x1b7   : > { %1384 = vmatpush3.msra.mxu1 %v654_v44 }
 0x1b8   : > { %1386 = vmatmul.mubr.msk.f32.vlgmr.msra.gmra.mxu1 %vm537_vm4, %v1289_v42  ;;  %1393 = vmatprep.subr.mxu1 %v1618_v36 }
 0x1b9   : > { %v776_v45 = vpop.permute.xlu0 %775  ;;  %1395 = vmatprep.mubr.msk.f32.mxu1 %vm1619_vm2, %v1618_v36  ;;  %v898_v48 = vpop.permute.xlu1 %897 }
 0x1ba   : > { %v779_v47 = vsel %vm778_vm6, %v773_v43, %v776_v45 }
 0x1bb   : > { %1389 = vmatpush3.msra.mxu0 %v779_v47 }
 0x1bc   : > { %1391 = vmatmul.mubr.msk.f32.vlgmr.msra.gmra.mxu0 %vm537_vm4, %v1292_v46 }
 0x1bd   : > { %v901_v49 = vpop.permute.xlu0 %900 }
 0x1be   : > { %v904_v51 = vsel %vm903_vm7, %v898_v48, %v901_v49 }
 0x1bf   : > { %1394 = vmatpush3.msra.mxu1 %v904_v51 }
 0x1c0   : > { %1396 = vmatmul.mubr.msk.f32.vlgmr.msra.gmra.mxu1 %vm537_vm4, %v1295_v50 }
 0x274   : > { %v607_v52 = vpop.f32.mrf.mxu0 }
 0x275   : > { %v612_v62 = vsel %vm611_vm11, %v607_v52, 0.0 }
 0x276   : > { %v1382_v53 = vpop.f32.mrf.mxu0 }
 0x278   : > { %v726_v54 = vpop.f32.mrf.mxu1 }
 0x279   : > { %v731_v55 = vsel %vm730_vm8, %v726_v54, 0.0 }
 0x27a   : > { %732 = vadd.xlane.f32.xlu1 %v731_v55  ;;  %v1387_v56 = vpop.f32.mrf.mxu1 }
 0x27c   : > { %v851_v57 = vpop.f32.mrf.mxu0 }
 0x27d   : > { %v856_v58 = vsel %vm855_vm9, %v851_v57, 0.0 }
 0x27e   : > { %857 = vadd.xlane.f32.xlu0 %v856_v58  ;;  %v1392_v59 = vpop.f32.mrf.mxu0 }
 0x280   : > { %v976_v60 = vpop.f32.mrf.mxu1 }
 0x281   : > { %v981_v61 = vsel %vm980_vm10, %v976_v60, 0.0 }
 0x282   : > { %982 = vadd.xlane.f32.xlu1 %v981_v61  ;;  %613 = vadd.xlane.f32.xlu0 %v612_v62  ;;  %v1397_v63 = vpop.f32.mrf.mxu1 }
 0x303   : > { %v733_v0 = vpop.xlane.xlu1 %732 }
 0x304   : > { %v735_v1 = vmul.f32 0.055555556, %v733_v0 }
 0x306   : > { %v1863_v2 = vsub.f32 %v726_v54, %v735_v1 }
 0x307   : > { %v858_v3 = vpop.xlane.xlu0 %857 }
 0x308   : > { %v860_v4 = vmul.f32 0.125, %v858_v3  ;;  %v737_v5 = vmul.f32 %v1863_v2, %v1863_v2 }
 0x30a   : > { %v1867_v6 = vsub.f32 %v851_v57, %v860_v4  ;;  %v738_v7 = vsel %vm730_vm8, %v737_v5, 0.0 }
 0x30b   : > { %v983_v8 = vpop.xlane.xlu1 %982  ;;  %739 = vadd.xlane.f32.xlu0 %v738_v7  ;;  %v614_v9 = vpop.xlane.xlu0 %613 }
 0x30c   : > { %v985_v10 = vmul.f32 0.5, %v983_v8  ;;  %v616_v11 = vmul.f32 0.013888889, %v614_v9  ;;  %v862_v12 = vmul.f32 %v1867_v6, %v1867_v6 }
 0x30e   : > { %v1872_v13 = vsub.f32 %v976_v60, %v985_v10  ;;  %v1874_v14 = vsub.f32 %v607_v52, %v616_v11  ;;  %v863_v15 = vsel %vm855_vm9, %v862_v12, 0.0 }
 0x30f   : > { %864 = vadd.xlane.f32.xlu1 %v863_v15 }
 0x310   : > { %v987_v16 = vmul.f32 %v1872_v13, %v1872_v13  ;;  %v618_v17 = vmul.f32 %v1874_v14, %v1874_v14 }
 0x312   : > { %v988_v18 = vsel %vm980_vm10, %v987_v16, 0.0  ;;  %v619_v19 = vsel %vm611_vm11, %v618_v17, 0.0 }
 0x313   : > { %989 = vadd.xlane.f32.xlu1 %v988_v18  ;;  %620 = vadd.xlane.f32.xlu0 %v619_v19 }
 0x324   : > { %635 = vperm.xlu1 %1509, %v623_v21  }
 0x328   : > { %755 = vperm.xlu1 %1509, %v1291_v22  }
 0x32c   : > { %880 = vperm.xlu1 %1509, %v1294_v23  }
 0x330   : > { %1510 = vset.pattern.permute.xlu1 %v1626_v24 }
 0x394   : > { %v740_v25 = vpop.xlane.xlu0 %739 }
 0x395   : > { %v741_v26 = vmul.f32 0.055555556, %v740_v25 }
 0x397   : > { %v744_v27 = vadd.f32 1e-05, %v741_v26 }
 0x398   : > { %v865_v28 = vpop.xlane.xlu1 %864 }
 0x399   : > { %1513 = vrsqrt.f32 %v744_v27  ;;  %v866_v29 = vmul.f32 0.125, %v865_v28 }
 0x39b   : > { %v869_v30 = vadd.f32 1e-05, %v866_v29 }
 0x39c   : > { %v990_v31 = vpop.xlane.xlu1 %989  ;;  %v621_v32 = vpop.xlane.xlu0 %620 }
 0x39d   : > { %1515 = vrsqrt.f32 %v869_v30  ;;  %v991_v33 = vmul.f32 0.5, %v990_v31  ;;  %v622_v34 = vmul.f32 0.013888889, %v621_v32 }
 0x39f   : > { %v994_v35 = vadd.f32 1e-05, %v991_v33  ;;  %v624_v36 = vadd.f32 1e-05, %v622_v34 }
 0x3a0   : > { %v636_v46 = vpop.permute.xlu1 %635 }
 0x3a1   : > { %1517 = vrsqrt.f32 %v994_v35 }
 0x3a2   : > { %1519 = vrsqrt.f32 %v624_v36 }
 0x3a4   : > { %v756_v47 = vpop.permute.xlu1 %755 }
 0x3a6   : > { %v1514_v37 = vpop.eup %1513 }
 0x3a7   : > { %v746_v38 = vmul.f32 %v1514_v37, %v1291_v22 }
 0x3a8   : > { %v881_v48 = vpop.permute.xlu1 %880 }
 0x3a9   : > { %749 = vperm.xlu1 %1510, %v746_v38  }
 0x3aa   : > { %v1516_v39 = vpop.eup %1515 }
 0x3ab   : > { %v871_v40 = vmul.f32 %v1516_v39, %v1294_v23 }
 0x3ad   : > { %874 = vperm.xlu1 %1510, %v871_v40  }
 0x3ae   : > { %v1518_v42 = vpop.eup %1517 }
 0x3af   : > { %v1520_v43 = vpop.eup %1519  ;;  %v996_v44 = vmul.f32 %v1518_v42, %v1297_v41 }
 0x3b0   : > { %v626_v45 = vmul.f32 %v1520_v43, %v623_v21 }
 0x3b1   : > { %999 = vperm.xlu1 %1510, %v996_v44  }
 0x3b2   : > { %629 = vperm.xlu0 %1508, %v626_v45  }
 0x3b5   : > { %1511 = vset.pattern.permute.xlu1 %v1625_v20 }
 0x3b6   : > { %1005 = vperm.xlu1 %1511, %v1297_v41   ;;  %1512 = vset.pattern.permute.xlu0 %v1625_v20 }
 0x424   : > { %v750_v49 = vpop.permute.xlu1 %749 }
 0x425   : > { %v752_v50 = vmul.f32 %v750_v49, %v1863_v2 }
 0x427   : > { %v758_v51 = vadd.f32 %v756_v47, %v752_v50 }
 0x428   : > { %v875_v52 = vpop.permute.xlu1 %874 }
 0x429   : > { %v759_v53 = vmax.f32 %v758_v51, 0.0  ;;  %v877_v54 = vmul.f32 %v875_v52, %v1867_v6 }
 0x42b   : > { %v883_v55 = vadd.f32 %v881_v48, %v877_v54  ;;  %761 = vrot.lane.b32.xlu0 %v759_v53, %s1616_s12  ;;  %s1630_s12 = smov 41  }
 0x42c   : > { %v1000_v56 = vpop.permute.xlu1 %999 }
 0x42d   : > { %v884_v57 = vmax.f32 %v883_v55, 0.0  ;;  %v630_v58 = vpop.permute.xlu0 %629  ;;  %v1002_v60 = vmul.f32 %v1000_v56, %v1872_v13 }
 0x42e   : > { %v632_v59 = vmul.f32 %v630_v58, %v1874_v14 }
 0x42f   : > { %886 = vrot.lane.b32.xlu0 %v884_v57, %s1627_s26 }
 0x430   : > { %v638_v61 = vadd.f32 %v636_v46, %v632_v59 }
 0x431   : > { %v1006_v62 = vpop.permute.xlu1 %1005 }
 0x432   : > { %v639_v63 = vmax.f32 %v638_v61, 0.0  ;;  %v1008_v0 = vadd.f32 %v1006_v62, %v1002_v60 }
 0x434   : > { %v1009_v1 = vmax.f32 %v1008_v0, 0.0  ;;  %642 = vrot.lane.b32.xlu1 %v639_v63, %s1620_s8  ;;  %v640_v12 = vsel %vm534_vm3, %v639_v63, 0.0 }
 0x436   : > { %1011 = vrot.lane.b32.xlu0 %v1009_v1, %s1628_s13 }
 0x438   : > { %767 = vrot.lane.b32.xlu1 %v759_v53, %s1629_s9 }
 0x43c   : > { %892 = vrot.lane.b32.xlu1 %v884_v57, %s1630_s12 }
 0x440   : > { %1015 = vrot.lane.b32.xlu1 %v1009_v1, %s1631_s15 }
 0x49d   : > { %v762_v2 = vpop.permute.xlu0 %761 }
 0x49e   : > { %v764_v3 = vsel %vm534_vm3, 0.0, %v762_v2 }
 0x49f   : > { %v766_v6 = vsel %vm765_vm12, %v764_v3, 0.0 }
 0x4a0   : > { %v1020_v8 = vrot.slane %v766_v6, 6 }
 0x4a1   : > { %v887_v4 = vpop.permute.xlu0 %886 }
 0x4a2   : > { %v889_v5 = vsel %vm765_vm12, 0.0, %v887_v4  ;;  %v1038_v14 = vsel %vm1037_vm14, %v640_v12, %v1020_v8 }
 0x4a3   : > { %v891_v7 = vsel %vm890_vm13, %v889_v5, 0.0 }
 0x4a4   : > { %v1023_v10 = vrot.slane %v891_v7, 4 }
 0x4a6   : > { %v643_v9 = vpop.permute.xlu1 %642  ;;  %v1040_v17 = vsel %vm1039_vm15, %v1038_v14, %v1023_v10 }
 0x4a7   : > { %v645_v27 = vsel %vm534_vm3, %v643_v9, 0.0 }
 0x4a8   : > { %v1012_v11 = vpop.permute.xlu0 %1011 }
 0x4a9   : > { %v1014_v13 = vsel %vm890_vm13, 0.0, %v1012_v11 }
 0x4aa   : > { %v1026_v15 = vrot.slane %v1014_v13, 2  ;;  %v768_v16 = vpop.permute.xlu1 %767 }
 0x4ab   : > { %v770_v18 = vsel %vm534_vm3, 0.0, %v768_v16 }
 0x4ac   : > { %v1042_v19 = vsel %vm1041_vm0, %v1040_v17, %v1026_v15  ;;  %v771_v20 = vsel %vm765_vm12, %v770_v18, 0.0 }
 0x4ad   : > { %1047 = vst.msk [vmem:[#allocation3] sm:$0xff] %vm1046_vm1, %v1042_v19  ;;  %v1029_v23 = vrot.slane %v771_v20, 6 }
 0x4ae   : > { %v893_v21 = vpop.permute.xlu1 %892 }
 0x4af   : > { %v895_v22 = vsel %vm765_vm12, 0.0, %v893_v21  ;;  %v1043_v29 = vsel %vm1037_vm14, %v645_v27, %v1029_v23 }
 0x4b0   : > { %v896_v24 = vsel %vm890_vm13, %v895_v22, 0.0 }
 0x4b1   : > { %v1032_v25 = vrot.slane %v896_v24, 4 }
 0x4b2   : > { %v1016_v26 = vpop.permute.xlu1 %1015 }
 0x4b3   : > { %v1018_v28 = vsel %vm890_vm13, 0.0, %v1016_v26  ;;  %v1044_v31 = vsel %vm1039_vm15, %v1043_v29, %v1032_v25 }
 0x4b4   : > { %v1035_v30 = vrot.slane %v1018_v28, 2 }
 0x4b6   : > { %v1045_v32 = vsel %vm1041_vm0, %v1044_v31, %v1035_v30 }
 0x4b7   : > { %1048 = vst.msk [vmem:[#allocation3 + $0x8] sm:$0xff] %vm1046_vm1, %v1045_v32 }
 0x4b8 PF: > { %p1298_p3 = scmp.lt.s32.totalorder %s1737_s10, 2 }
 0x4ba   : > { %1052 = sbr.rel (%p1298_p3) target bundleno = 1426 (0x592), region = 132 }
 0x4bf   : > { %v1061_v33 = vld [vmem:[%s1809_s21 + $0x30] sm:$0x3]  ;;  %vm1069_vm2 = vcmask 1041408   ;;  %v1060_v34 = vld [vmem:[%s1809_s21 + $0x28] sm:$0xff]  ;;  %vm1062_vm3 = vcmask 408576   ;;  %v1059_v35 = vld [vmem:[%s1809_s21 + $0x20] sm:$0xff] }
 0x4c0   : > { %1398 = vmatprep.subr.msk.mxu0 %vm1069_vm2, %v1061_v33  ;;  %v1053_v36 = vld [vmem:[#allocation3] sm:$0xff]  ;;  %v1056_v39 = vld [vmem:[%s1809_s21 + $0x8] sm:$0xff]  ;;  %v1055_v40 = vld [vmem:[%s1809_s21] sm:$0xff] }
 0x4c1   : > { %1399 = vmatpush3.msk.msra.mxu0 %vm1069_vm2, %v1061_v33  ;;  %1412 = vmatprep.mubr.msk.f32.mxu0 %vm1062_vm3, %v1053_v36  ;;  %v1058_v37 = vld [vmem:[%s1809_s21 + $0x18] sm:$0xff]  ;;  %v1057_v38 = vld [vmem:[%s1809_s21 + $0x10] sm:$0xff] }
 0x4c2   : > { %1400 = vmatprep.subr.mxu0 %v1060_v34  ;;  %v1054_v41 = vld [vmem:[#allocation3 + $0x8] sm:$0xff] }
 0x4c3   : > { %1401 = vmatpush3.msra.mxu0 %v1060_v34 }
 0x4c4   : > { %1402 = vmatprep.subr.mxu0 %v1059_v35 }
 0x4c5   : > { %1403 = vmatpush3.msra.mxu0 %v1059_v35 }
 0x4c6   : > { %1404 = vmatprep.subr.mxu0 %v1058_v37 }
 0x4c7   : > { %1405 = vmatpush3.msra.mxu0 %v1058_v37 }
 0x4c8   : > { %1406 = vmatprep.subr.mxu0 %v1057_v38 }
 0x4c9   : > { %1407 = vmatpush3.msra.mxu0 %v1057_v38 }
 0x4ca   : > { %1408 = vmatprep.subr.mxu0 %v1056_v39 }
 0x4cb   : > { %1409 = vmatpush3.msra.mxu0 %v1056_v39 }
 0x4cc   : > { %1410 = vmatprep.subr.mxu0 %v1055_v40 }
 0x4cd   : > { %1411 = vmatpush3.msra.mxu0 %v1055_v40 }
 0x4ce   : > { %1413 = vmatmul.mubr.msk.f32.vlgmr.msra.gmra.mxu0 %vm1062_vm3, %v1054_v41 }
 0x58e   : > { %v1414_v42 = vpop.f32.mrf.mxu0 }
 0x58f   : > { %1149 = vst [vmem:[%s1811_s11 + $0x8] sm:$0xff] %v1414_v42 }
 0x590   : > { %v1139_v43 = vpop.f32.mrf.mxu0 }
 0x591   : > { %1148 = vst [vmem:[%s1811_s11] sm:$0xff] %v1139_v43 }
 0x592 PF: > { %s1169_s8 = sshll.u32 %s1811_s11, 4  ;;  %s2019_s26 = sld [smem:[#allocation13_spill]]  ;;  %s1936_s8 = int_to_ptr.vmem [resolvable:$true] %s1169_s8 }
 0x593   : > { %s1159_s21 = scalar_select %p1286_p0, 1, 0 }
 0x594   : > { %s1946_s9 = scalar_lea.sflag [#allocation7], %s389_s17  ;;  %s1521_s11 = scalar_lea.vmem %s1936_s8, 256 }
 0x595   : > { %s1303_s5 = sshll.u32 %s1159_s21, 1  ;;  %p1522_p5 = scmp.ne.s32.totalorder %s1936_s8, %s1521_s11 }
 0x596   : > { %s1161_s2 = ssub.s32 %s1737_s10, %s1303_s5  ;;  %s1632_s12 = smov [#allocation6]  }
 0x597   : > { %s1166_s7 = sadd.s32 %s1303_s5, %s1161_s2  ;;  %p1523_p7 = pnand %p1522_p5, %p1760_p1 }
 0x598   : > { %s1305_s6 = sshll.u32 %s1166_s7, 7  ;;  %s1525_s15 = sshll.u32 %s1632_s12, 4  ;;  %s1526_s15 = int_to_ptr.vmem [resolvable:$false] %s1525_s15 }
 0x599   : > { %s1942_s13 = scalar_lea.hbm %s2019_s26, %s1305_s6  ;;  %p1524_p6 = pneg %p1523_p7 }
 0x59a   : > { %s1527_s21 = scalar_lea.vmem %s1526_s15, 512  ;;  %p1528_p8 = scmp.lt.s32.totalorder %s1936_s8, %s1526_s15 }
 0x59b   : > { %p1529_p10 = scmp.lt.s32.totalorder %s1527_s21, %s1521_s11 }
 0x59d   : > { %p1530_p11 = por %p1529_p10, %p1528_p8 }
 0x59f   : > { %p1531_p12 = pnand %p1530_p11, %p1524_p6 }
 0x5a1   : > { %1534 = shalt.err (!%p1531_p12)
}
 0x5a2   : > { %s1535_s10 = scalar_lea.hbm %s1942_s13, 256  ;;  %s1539_s2 = scalar_lea.hbm %s2019_s26, 1024 }
 0x5a3   : > { %p1536_p13 = scmp.ne.s32.totalorder %s1942_s13, %s1535_s10  ;;  %p1540_p3 = scmp.lt.s32.totalorder %s1942_s13, %s2019_s26 }
 0x5a4   : > { %p1541_p5 = scmp.lt.s32.totalorder %s1539_s2, %s1535_s10 }
 0x5a5   : > { %p1537_p0 = pnand %p1536_p13, %p1760_p1 }
 0x5a6   : > { %p1542_p7 = por %p1541_p5, %p1540_p3 }
 0x5a7   : > { %p1538_p2 = pneg %p1537_p0 }
 0x5a9   : > { %p1543_p6 = pnand %p1542_p7, %p1538_p2 }
 0x5ab   : > { %1546 = shalt.err (!%p1543_p6)
}
 0x5ac   : > { %s1633_s29 = smov 128   ;;  %s1634_s23 = smov 512  }
 0x5ad   : > { %s1635_s11 = smov 8  }
 0x5ae   : > { %1417 = dma.vmem_to_hbm [thread:$0]  (%p1760_p1), %s1936_s8, 256, %s1942_s13, %s1946_s9, %s1633_s29, %s1634_s23, %s1635_s11  }
 0x5af PF: > { %s1184_s12 = sand.u32 1, %s1585_s18   ;;  %p1420_p8 = pnand %p1769_p4, %p156_p9 }
 0x5b0   : > { %s1185_s15 = scalar_lea.sflag [#allocation7], %s1184_s12 }
 0x5b1   : > { %p1421_p10 = pneg %p1420_p8 }
 0x5b3   : > { %1580 = dma.done.wait (%p1421_p10), %s1185_s15, 256  }
 0x5b4   : > { %1582 = vsyncadd (%p1421_p10), %s1185_s15, 4294967040  ;;  %s2020_s10 = sld [smem:[#allocation10_spill]]  ;;  %p15_p1 = scmp.ge.s32.totalorder %s1710_s27, 6  }
 0x5b5   : > { %s2021_s28 = sld [smem:[#allocation9_spill]]  ;;  %s2022_s18 = smov %s1589_s19 }
 0x5b6   : > { %s2023_s19 = smov %s1593_s20  ;;  %s2024_s20 = smov %s1775_s16 }
 0x5b7   : > { %s2025_s21 = smov %s1601_s22  ;;  %s2027_s23 = smov %s1609_s24 }
 0x5b8   : > { %s2029_s25 = smov %s1710_s27  ;;  %17 = sbr.rel (!%p15_p1) target bundleno = 9 (0x9), region = 189 }
 0x5ba   : > { %s2026_s22 = smov %s2020_s10 }
 0x5bb   : > { %s2028_s24 = smov %s2021_s28 }
 0x5bd   :  { %1190 = vsyncpa [#allocation7], 1 }
 0x5be   :  { %1192 = vsyncpa [#allocation7 + $0x1], 1 }

</bundles_post_ra>
